<compile_context>
chip_gen: v7x
topology: tpu7x:2x2x1
jax: 0.10.0
libtpu: 0.0.40
codegen_flags: <defaults>
</compile_context>

<pallas_src>
import jax
import jax.numpy as jnp
from jax.experimental import pallas as pl
from jax.experimental.pallas import tpu as pltpu


def _round_up(x, m):
    return (x + m - 1) // m * m


def _cdiv(a, b):
    return -(-a // b)


def mlp_probe_kernel(x_ref, w1_ref, b1_ref, w2_ref, b2_ref, o_ref):
    # x_ref : (bm, d)   input dtype (f32 by default)
    # w1_ref: (d, H)    compute dtype (H = hidden padded to 128)
    # b1_ref: (1, H)    f32
    # w2_ref: (1, H)    f32  (second-layer weights as a lane-dense row)
    # b2_ref: (1, 1)    f32, SMEM scalar
    # o_ref : (bm, 1)   f32
    x = x_ref[...]
    if x.dtype != w1_ref.dtype:
        # Optional bf16 compute path: cast in VMEM right before the MXU dot
        # (no extra HBM pass in the wrapper).
        x = x.astype(w1_ref.dtype)

    h = jnp.dot(x, w1_ref[...], preferred_element_type=jnp.float32)   # (bm, H)
    h = jnp.maximum(h + b1_ref[...], 0.0)                             # ReLU, f32

    # Layer 2: VPU multiply against the broadcast w2 row + XLU lane-sum reduce.
    # Avoids the A@B^T dot_general that made the (bm, H) activation the MXU
    # stationary operand (transpose / per-256-lane weight reloads).
    o = jnp.sum(h * w2_ref[...], axis=1, keepdims=True)               # (bm, 1)

    o_ref[...] = jax.nn.sigmoid(o + b2_ref[0, 0]).astype(o_ref.dtype)


def mlp_probe(x, w1, b1, w2, b2, *, bm=None, compute_dtype=None,
              vmem_limit_bytes=None):
    """Forward pass of MLPProbe. x: (N, d) -> (N, 1) float32.

    w1: (d, hidden), b1: (hidden,), w2: (hidden, 1), b2: (1,).
    compute_dtype=None (default) keeps exact float32 semantics; pass
    jnp.bfloat16 to opt in to a bf16 MXU path (x is cast inside the kernel,
    accumulation / bias / ReLU / sigmoid stay float32).
    """
    N, d = x.shape
    hidden = w1.shape[1]
    H = _round_up(hidden, 128)                      # 100 -> 128, numerically exact
    if compute_dtype is None:
        compute_dtype = jnp.float32
    x_item = jnp.dtype(x.dtype).itemsize
    w_item = jnp.dtype(compute_dtype).itemsize
    sub = {1: 32, 2: 16, 4: 8}.get(x_item, 8)       # sublane packing for x rows

    # ---- batch tile: budget from ALL VMEM users, not just x ------------------
    auto_bm = bm is None
    if auto_bm:
        # 2x x tile (double-buffered) + ~4 f32 (bm,H)-sized temporaries
        # (h, relu, h*w2, slack) + 2x out tile, within a ~16 MiB working set.
        per_row = 2 * d * x_item + 4 * H * 4 + 2 * 4
        bm = max(512, min(8192, ((16 << 20) // per_row) // 512 * 512))
    bm = _round_up(int(bm), sub)
    bm = min(bm, _round_up(N, sub))                 # never (much) bigger than the batch
    num_tiles = _cdiv(N, bm)

    # v7x megacore: an even tile count keeps both TensorCores busy; on
    # single-TC v5e/v6e this costs at most one extra ~0.35us pipeline step.
    if auto_bm and num_tiles > 1 and num_tiles % 2 == 1:
        bm_alt = _round_up(_cdiv(N, num_tiles + 1), sub)
        if _cdiv(N, bm_alt) % 2 == 0:
            bm = bm_alt
            num_tiles = _cdiv(N, bm)

    # ---- tiny parameter plumbing (O(d*H), negligible) -------------------------
    w1p = jnp.pad(w1.astype(jnp.float32), ((0, 0), (0, H - hidden))).astype(compute_dtype)
    b1p = jnp.pad(b1.reshape(1, hidden).astype(jnp.float32), ((0, 0), (0, H - hidden)))
    w2p = jnp.pad(w2.reshape(1, hidden).astype(jnp.float32), ((0, 0), (0, H - hidden)))
    b2p = b2.reshape(1, 1).astype(jnp.float32)

    # ---- VMEM limit derived from the actual buffer sum (fits v7x's 64 MiB) ----
    if vmem_limit_bytes is None:
        buf = (2 * bm * d * x_item        # x tiles (double-buffered)
               + 2 * d * H * w_item       # w1 (constant index, worst case 2 bufs)
               + 4 * bm * H * 4           # f32 hidden-sized temporaries
               + 2 * bm * 4               # out tiles
               + 4 * H * 4)               # b1 / w2 rows
        vmem_limit_bytes = int(min(max(32 << 20, buf + (8 << 20)), 48 << 20))

    cost = pl.CostEstimate(
        flops=2 * N * d * H + 3 * N * H,
        transcendentals=N,
        bytes_accessed=N * d * x_item + d * H * w_item + (2 * H + 1) * 4 + N * 4,
    )

    out = pl.pallas_call(
        mlp_probe_kernel,
        out_shape=jax.ShapeDtypeStruct((N, 1), jnp.float32),
        grid_spec=pltpu.PrefetchScalarGridSpec(
            num_scalar_prefetch=0,
            grid=(num_tiles,),
            in_specs=[
                pl.BlockSpec((bm, d), lambda i: (i, 0)),               # x tile over batch
                pl.BlockSpec((d, H), lambda i: (0, 0)),                # w1 (resident)
                pl.BlockSpec((1, H), lambda i: (0, 0)),                # b1
                pl.BlockSpec((1, H), lambda i: (0, 0)),                # w2 row
                pl.BlockSpec(memory_space=pltpu.MemorySpace.SMEM),     # b2 scalar
            ],
            out_specs=pl.BlockSpec((bm, 1), lambda i: (i, 0)),
        ),
        compiler_params=pltpu.CompilerParams(
            dimension_semantics=("parallel",),
            vmem_limit_bytes=vmem_limit_bytes,
        ),
        cost_estimate=cost,
    )(x, w1p, b1p, w2p, b2p)

    return out


def mlp_probe_ref(x, w1, b1, w2, b2):
    h = jnp.maximum(x @ w1 + b1, 0.0)
    return jax.nn.sigmoid(h @ w2 + b2)


if __name__ == "__main__":
    key = jax.random.PRNGKey(0)
    k_x, k_w1, k_b1, k_w2, k_b2, k_x2, k_x3 = jax.random.split(key, 7)

    d, hidden = 32, 100        # MLPProbe(d=32): Linear(32,100) -> ReLU -> Linear(100,1)
    N = 8

    # Deterministic parameter init (mimics nn.Linear's uniform(-1/sqrt(in), 1/sqrt(in)))
    lim1 = 1.0 / jnp.sqrt(jnp.float32(d))
    lim2 = 1.0 / jnp.sqrt(jnp.float32(hidden))
    w1 = jax.random.uniform(k_w1, (d, hidden), jnp.float32, -lim1, lim1)
    b1 = jax.random.uniform(k_b1, (hidden,), jnp.float32, -lim1, lim1)
    w2 = jax.random.uniform(k_w2, (hidden, 1), jnp.float32, -lim2, lim2)
    b2 = jax.random.uniform(k_b2, (1,), jnp.float32, -lim2, lim2)

    # Small batch, exact float32 semantics (the default path).
    x = jax.random.normal(k_x, (N, d), dtype=jnp.float32)
    ref = mlp_probe_ref(x, w1, b1, w2, b2)
    out = jax.block_until_ready(mlp_probe(x, w1, b1, w2, b2))
    assert out.shape == (N, 1)
    assert jnp.allclose(out, ref, atol=1e-5, rtol=1e-5)

    # Multi-tile grid with a partial last block (no host-side padding of x).
    N2 = 200
    x2 = jax.random.normal(k_x2, (N2, d), dtype=jnp.float32)
    out2 = jax.block_until_ready(mlp_probe(x2, w1, b1, w2, b2, bm=128))
    ref2 = mlp_probe_ref(x2, w1, b1, w2, b2)
    assert out2.shape == (N2, 1)
    assert jnp.allclose(out2, ref2, atol=1e-5, rtol=1e-5)

    # Batch not a multiple of 8: exercises the rounded tile + partial tail.
    N3 = 203
    x3 = jax.random.normal(k_x3, (N3, d), dtype=jnp.float32)
    out3 = jax.block_until_ready(mlp_probe(x3, w1, b1, w2, b2, bm=64))
    ref3 = mlp_probe_ref(x3, w1, b1, w2, b2)
    assert out3.shape == (N3, 1)
    assert jnp.allclose(out3, ref3, atol=1e-5, rtol=1e-5)

    # Opt-in bf16 MXU path: x cast inside the kernel, accumulation stays f32.
    out_bf16 = jax.block_until_ready(
        mlp_probe(x, w1, b1, w2, b2, compute_dtype=jnp.bfloat16))
    assert out_bf16.shape == (N, 1)
    assert jnp.allclose(out_bf16, ref, atol=5e-2, rtol=5e-2)

    print("KERNEL_OK")
</pallas_src>

<mosaic_0001>
module attributes {stable_mosaic.version = 11 : i64} {
  func.func @mlp_probe_kernel(%arg0: i32, %arg1: memref<8x32xf32, #tpu.memory_space<vmem>>, %arg2: memref<32x128xf32, #tpu.memory_space<vmem>>, %arg3: memref<1x128xf32, #tpu.memory_space<vmem>>, %arg4: memref<1x128xf32, #tpu.memory_space<vmem>>, %arg5: memref<1x1xf32, #tpu.memory_space<smem>>, %arg6: memref<8x1xf32, #tpu.memory_space<vmem>>) attributes {dimension_semantics = [#tpu.dimension_semantics<parallel>], iteration_bounds = array<i64: 1>, scalar_prefetch = 0 : i64, scratch_operands = 0 : i64, tpu.core_type = #tpu.core_type<tc>, window_params = [{transform_indices = @transform_0, window_bounds = array<i64: 8, 32>}, {pipeline_mode = #tpu.pipeline_mode<synchronous>, transform_indices = @transform_1, window_bounds = array<i64: 32, 128>}, {pipeline_mode = #tpu.pipeline_mode<synchronous>, transform_indices = @transform_2, window_bounds = array<i64: 1, 128>}, {pipeline_mode = #tpu.pipeline_mode<synchronous>, transform_indices = @transform_3, window_bounds = array<i64: 1, 128>}, {transform_indices = @transform_4, window_bounds = array<i64: 1, 1>}, {transform_indices = @transform_5, window_bounds = array<i64: 8, 1>}]} {
    %c0 = arith.constant 0 : index
    %c0_0 = arith.constant 0 : index
    %0 = vector.load %arg1[%c0, %c0_0] : memref<8x32xf32, #tpu.memory_space<vmem>>, vector<8x32xf32>
    %c0_1 = arith.constant 0 : index
    %c0_2 = arith.constant 0 : index
    %1 = vector.load %arg2[%c0_1, %c0_2] : memref<32x128xf32, #tpu.memory_space<vmem>>, vector<32x128xf32>
    %cst = arith.constant dense<0.000000e+00> : vector<8x128xf32>
    %2 = tpu.matmul %0, %1, %cst {dimension_numbers = #tpu.dot_dimension_numbers<[1], [0], [0], [1], [0, 0, 1, 1], [], []>} : vector<8x32xf32>, vector<32x128xf32>, vector<8x128xf32> -> vector<8x128xf32>
    %c0_3 = arith.constant 0 : index
    %c0_4 = arith.constant 0 : index
    %3 = vector.load %arg3[%c0_3, %c0_4] : memref<1x128xf32, #tpu.memory_space<vmem>>, vector<1x128xf32>
    %4 = vector.broadcast %3 : vector<1x128xf32> to vector<8x128xf32>
    %5 = arith.addf %2, %4 : vector<8x128xf32>
    %cst_5 = arith.constant 0.000000e+00 : f32
    %6 = vector.broadcast %cst_5 : f32 to vector<8x128xf32>
    %7 = arith.maximumf %5, %6 : vector<8x128xf32>
    %c0_6 = arith.constant 0 : index
    %c0_7 = arith.constant 0 : index
    %8 = vector.load %arg4[%c0_6, %c0_7] : memref<1x128xf32, #tpu.memory_space<vmem>>, vector<1x128xf32>
    %9 = vector.broadcast %8 : vector<1x128xf32> to vector<8x128xf32>
    %10 = arith.mulf %7, %9 : vector<8x128xf32>
    %cst_8 = arith.constant dense<0.000000e+00> : vector<8xf32>
    %11 = vector.multi_reduction <add>, %10, %cst_8 [1] : vector<8x128xf32> to vector<8xf32>
    %12 = vector.shape_cast %11 : vector<8xf32> to vector<8x1xf32>
    %c0_9 = arith.constant 0 : index
    %c0_10 = arith.constant 0 : index
    %13 = memref.load %arg5[%c0_9, %c0_10] : memref<1x1xf32, #tpu.memory_space<smem>>
    %14 = vector.broadcast %13 : f32 to vector<8x1xf32>
    %15 = arith.addf %12, %14 : vector<8x1xf32>
    %16 = arith.negf %15 : vector<8x1xf32>
    %17 = math.exp %16 : vector<8x1xf32>
    %cst_11 = arith.constant 1.000000e+00 : f32
    %18 = vector.broadcast %cst_11 : f32 to vector<8x1xf32>
    %19 = arith.addf %18, %17 : vector<8x1xf32>
    %20 = arith.divf %18, %19 : vector<8x1xf32>
    %c0_12 = arith.constant 0 : index
    %c0_13 = arith.constant 0 : index
    %21 = vector.load %arg6[%c0_12, %c0_13] : memref<8x1xf32, #tpu.memory_space<vmem>>, vector<8x1xf32>
    tpu.vector_store %arg6[%c0_12, %c0_13], %20 {strides = array<i32>} : memref<8x1xf32, #tpu.memory_space<vmem>>, vector<8x1xf32>,
    return
  }
  func.func @transform_0(%arg0: i32) -> (i32, i32) {
    %c0_i32 = arith.constant 0 : i32
    %c0_i32_0 = arith.constant 0 : i32
    return %arg0, %c0_i32 : i32, i32
  }
  func.func @transform_1(%arg0: i32) -> (i32, i32) {
    %c0_i32 = arith.constant 0 : i32
    %c0_i32_0 = arith.constant 0 : i32
    %c0_i32_1 = arith.constant 0 : i32
    return %c0_i32, %c0_i32_0 : i32, i32
  }
  func.func @transform_2(%arg0: i32) -> (i32, i32) {
    %c0_i32 = arith.constant 0 : i32
    %c0_i32_0 = arith.constant 0 : i32
    %c0_i32_1 = arith.constant 0 : i32
    return %c0_i32, %c0_i32_0 : i32, i32
  }
  func.func @transform_3(%arg0: i32) -> (i32, i32) {
    %c0_i32 = arith.constant 0 : i32
    %c0_i32_0 = arith.constant 0 : i32
    %c0_i32_1 = arith.constant 0 : i32
    return %c0_i32, %c0_i32_0 : i32, i32
  }
  func.func @transform_4(%arg0: i32) -> (i32, i32) {
    %c0_i32 = arith.constant 0 : i32
    %c0_i32_0 = arith.constant 0 : i32
    %c0_i32_1 = arith.constant 0 : i32
    return %c0_i32, %c0_i32_0 : i32, i32
  }
  func.func @transform_5(%arg0: i32) -> (i32, i32) {
    %c0_i32 = arith.constant 0 : i32
    %c0_i32_0 = arith.constant 0 : i32
    return %arg0, %c0_i32 : i32, i32
  }
}

</mosaic_0001>

<bundles_post_ra>
// kernel: tpu_custom_call.1
= control target key start
LH: loop header
LB: loop body
LE: loop exit
PB: predicated region body
PF: predicated region fallthrough
CT: control target
= control target key end

     0   :  { %11 = vsyncpa [#allocation4], 0  ;;  %s326_s0 = inlined_call_operand.hbm [shape: f32[8,32], index: 0, kind: input, shape index: {}]   ;;  %s327_s1 = inlined_call_operand.hbm [shape: f32[32,128], index: 1, kind: input, shape index: {}]   ;;  %s328_s2 = inlined_call_operand.vmem [shape: f32[1,128], index: 2, kind: input, shape index: {}]   ;;  %s329_s3 = inlined_call_operand.vmem [shape: f32[1,128], index: 3, kind: input, shape index: {}]   ;;  %s330_s4 = inlined_call_operand.<no memory space> [shape: f32[1,1], index: 4, kind: input, shape index: {}]   ;;  %s331_s5 = inlined_call_operand.vmem [shape: f32[8,1], index: 5, kind: output, shape index: {}]  }
   0x1   :  { %12 = vsyncpa [#allocation6], 0  ;;  %s246_s18 = smov [#allocation3]   ;;  %s247_s20 = smov [#allocation5]  }
   0x2   :  { %s19_s19 = sshll.u32 %s246_s18, 4  ;;  %s28_s21 = sshll.u32 %s247_s20, 4  ;;  %s20_s19 = int_to_ptr.vmem [resolvable:$true] %s19_s19  ;;  %s283_s21 = int_to_ptr.vmem [resolvable:$true] %s28_s21 }
   0x3   :  { %s198_s24 = scalar_lea.hbm %s326_s0, 128 }
   0x4   :  { %p199_p0 = scmp.ne.s32.totalorder %s326_s0, %s198_s24  ;;  %p202_p1 = scmp.lt.u32.totalorder %s198_s24, %s326_s0 }
   0x6   :  { %p204_p2 = pnand %p202_p1, %p199_p0 }
   0x8   :  { %207 = shalt.err (!%p204_p2)
}
   0x9   :  { %s208_s29 = scalar_lea.vmem %s20_s19, 128  ;;  %p213_p4 = scmp.lt.s32.totalorder %s20_s19, %s20_s19 }
   0xa   :  { %p209_p3 = scmp.ne.s32.totalorder %s20_s19, %s208_s29  ;;  %p214_p5 = scmp.lt.s32.totalorder %s208_s29, %s208_s29 }
   0xc   :  { %p215_p6 = por %p214_p5, %p213_p4 }
   0xe   :  { %p216_p7 = pnand %p215_p6, %p209_p3 }
  0x10   :  { %219 = shalt.err (!%p216_p7)
}
  0x11   :  { %22 = dma.hbm_to_vmem [thread:$0]  %s326_s0, 128, %s20_s19, [#allocation4]  }
  0x12   :  { %s220_s9 = scalar_lea.hbm %s327_s1, 512 }
  0x13   :  { %p221_p8 = scmp.ne.s32.totalorder %s327_s1, %s220_s9  ;;  %p224_p9 = scmp.lt.u32.totalorder %s220_s9, %s327_s1 }
  0x15   :  { %p226_p10 = pnand %p224_p9, %p221_p8 }
  0x17   :  { %229 = shalt.err (!%p226_p10)
}
  0x18   :  { %s230_s14 = scalar_lea.vmem %s283_s21, 512  ;;  %p235_p12 = scmp.lt.s32.totalorder %s283_s21, %s283_s21 }
  0x19   :  { %p231_p11 = scmp.ne.s32.totalorder %s283_s21, %s230_s14  ;;  %p236_p13 = scmp.lt.s32.totalorder %s230_s14, %s230_s14 }
  0x1b   :  { %p237_p0 = por %p236_p13, %p235_p12 }
  0x1d   :  { %p238_p1 = pnand %p237_p0, %p231_p11 }
  0x1f   :  { %241 = shalt.err (!%p238_p1)
}
  0x20   :  { %s248_s0 = smov 128   ;;  %s249_s15 = smov 8  }
  0x21   :  { %34 = dma.hbm_to_vmem [thread:$0]  %s327_s1, 512, %s283_s21, [#allocation6], %s248_s0, %s248_s0, %s249_s15  }
  0x22   :  { %242 = dma.done.wait [#allocation4], 128  }
  0x23   :  { %243 = vsyncadd [#allocation4], 4294967168 }
  0x24   :  { %244 = dma.done.wait [#allocation6], 512  }
  0x25   :  { %245 = vsyncadd [#allocation6], 4294966784  ;;  %v250_v0 = vmov 0.0|0.0   ;;  %vm251_vm0 = vmmov 0   ;;  %v252_v1 = vmov 0.0   ;;  %v48_v2 = vld [vmem:[#allocation5] sm:$0xff]  ;;  %v145_v16 = vstv %s330_s4 }
  0x26   :  { %181 = vmatprep.subr.bf16.mxu0 %v250_v0  ;;  %178 = vmatprep.mubr.msk.f32.mxu0 %vm251_vm0, %v252_v1  ;;  %v49_v3 = vld [vmem:[#allocation5 + $0x8] sm:$0xff]  ;;  %v50_v4 = vld [vmem:[#allocation5 + $0x10] sm:$0xff]  ;;  %v51_v6 = vld [vmem:[#allocation5 + $0x18] sm:$0xff]  ;;  %vm59_vm1 = vcmask 261120   ;;  %vm153_vm2 = vcmask 7168  }
  0x27   :  { %v182_v5 = vpack.c.bf16 %v49_v3, %v48_v2  ;;  %v185_v7 = vpack.c.bf16 %v51_v6, %v50_v4  ;;  %v47_v8 = vld [vmem:[#allocation3] sm:$0xff] }
  0x28   :  { %v161_v9 = vld [vmem:[%s328_s2] ss:$0 sm:$0xff] }
  0x29   :  { %183 = vmatpush3.bf16.msra.mxu0 %v182_v5  ;;  %v163_v13 = vld [vmem:[%s329_s3] ss:$0 sm:$0xff] }
  0x2a   :  { %184 = vmatprep.subr.bf16.mxu0 %v250_v0 }
  0x2d   :  { %186 = vmatpush3.bf16.msra.mxu0 %v185_v7 }
  0x30   :  { %179 = vmatmul.mubr.msk.f32.vlgmr.msra.gmra.mrb[0].mxu0 %vm59_vm1, %v47_v8 }
 0x103   :  { %v129_v10 = vpop.f32.mrb[0].mxu0 }
 0x104   :  { %v130_v11 = vadd.f32 %v161_v9, %v129_v10  ;;  %v180_v12 = vpop.f32.mrb[1].mxu0 }
 0x106   :  { %v133_v14 = vmax.f32 %v130_v11, 0.0 }
 0x108   :  { %v141_v15 = vmul.f32 %v163_v13, %v133_v14 }
 0x10a   :  { %142 = vadd.xlane.f32.xlu0 %v141_v15 }
 0x197   :  { %v143_v17 = vpop.xlane.xlu0 %142 }
 0x198   :  { %v146_v18 = vadd.f32 %v145_v16, %v143_v17 }
 0x19a   :  { %v164_v19 = vmul.f32 -1.442695, %v146_v18 }
 0x19c   :  { %194 = vpow2.f32 %v164_v19 }
 0x1a6   :  { %v195_v20 = vpop.eup %194 }
 0x1a7   :  { %v150_v21 = vadd.f32 1.0, %v195_v20 }
 0x1a9   :  { %196 = vrcp.f32 %v150_v21 }
 0x1b3   :  { %v197_v22 = vpop.eup %196 }
 0x1b4   :  { %154 = vst.msk [vmem:[%s331_s5] sm:$0xff] %vm153_vm2, %v197_v22 }
 0x1b5   :  { %159 = vsyncpa [#allocation4], 1 }
 0x1b6   :  { %160 = vsyncpa [#allocation6], 1 }

</bundles_post_ra>
